<compile_context>
chip_gen: v7x
topology: tpu7x:2x2x1
jax: 0.10.0
libtpu: 0.0.40
codegen_flags: <defaults>
</compile_context>

<pallas_src>
import functools

import jax
import jax.numpy as jnp
from jax.experimental import pallas as pl
from jax.experimental.pallas import tpu as pltpu


def _round_up(x, m):
    return ((x + m - 1) // m) * m


def _vmem_budget_bytes():
    """~87% of physical VMEM (64 MiB v7x, 128 MiB v5e/v6e); 56 MiB fallback."""
    try:
        cap = int(pltpu.get_tpu_info().vmem_capacity_bytes)
    except Exception:
        cap = 64 * 1024 * 1024
    return cap * 7 // 8


# ----------------------------- Pallas kernel --------------------------------
def _fused_gcn_stack_kernel(a_ref, xw0_ref, w_ref, b_ref, o_ref, xw_pp,
                            *, num_layers, tm, n_pad, a_resident):
    """Whole GCN stack in one kernel.

    grid = (num_layers, num_row_blocks), layer axis outermost.  xw_pp is a
    (2*n_pad, f_pad) bf16 ping-pong buffer holding XW_l (read by every row
    block of layer l) and XW_{l+1} (written row-block-wise during layer l).
    """
    l = pl.program_id(0)                       # layer index
    i = pl.program_id(1)                       # row-block index
    last = num_layers - 1
    row0 = pl.multiple_of(i * tm, tm)

    slot_cur = l % 2                           # ping-pong slot holding XW_l
    cur_base = pl.multiple_of(slot_cur * n_pad, tm)
    nxt_start = pl.multiple_of((1 - slot_cur) * n_pad + i * tm, tm)

    # Seed slot 0 with the precomputed XW_0 = X @ W_0 (once, VMEM->VMEM copy).
    @pl.when(jnp.logical_and(l == 0, i == 0))
    def _():
        xw_pp[pl.ds(0, n_pad), :] = xw0_ref[...]

    # Rows of A_hat for this block: sliced from the resident copy, or the
    # streamed (tm, n_pad) tile when A does not fit VMEM.
    if a_resident:
        a_rows = a_ref[pl.ds(row0, tm), :]
    else:
        a_rows = a_ref[...]

    # Aggregation: h_rows = A[rows] @ XW_l + b_l   (bf16 MXU, f32 accumulate).
    xw_cur = xw_pp[pl.ds(cur_base, n_pad), :]
    h_rows = jnp.dot(a_rows, xw_cur, preferred_element_type=jnp.float32)
    h_rows = h_rows + b_ref[0]

    # Fused feature transform for the NEXT layer (all but last layer):
    # XW_{l+1}[rows] = relu(h_rows) @ W_{l+1}, stored into the other slot.
    @pl.when(l < last)
    def _():
        act = jnp.maximum(h_rows, 0.0).astype(jnp.bfloat16)
        nxt = jnp.dot(act, w_ref[0], preferred_element_type=jnp.float32)
        xw_pp[pl.ds(nxt_start, tm), :] = nxt.astype(jnp.bfloat16)

    # Last layer: no activation; write into the VMEM-resident output block
    # (constant block index -> single HBM writeback at the end of the grid).
    @pl.when(l == last)
    def _():
        o_ref[pl.ds(row0, tm), :] = h_rows


def fused_gcn_stack(a_pad_bf16, xw0_bf16, w_stack_bf16, b_stack, *,
                    num_layers, tm, n_pad, f_pad, a_resident, vmem_limit_bytes):
    """Run the whole padded GCN stack in a single pallas_call."""
    num_row_blocks = n_pad // tm
    kernel = functools.partial(_fused_gcn_stack_kernel, num_layers=num_layers,
                               tm=tm, n_pad=n_pad, a_resident=a_resident)

    if a_resident:
        # DMA'd once (constant block index), sliced row-wise in the kernel.
        a_spec = pl.BlockSpec((n_pad, n_pad), lambda l, i: (0, 0))
    else:
        # Streamed (tm, n_pad) row tiles (double-buffered by Pallas).
        a_spec = pl.BlockSpec((tm, n_pad), lambda l, i: (i, 0))

    # Layer l needs W_{l+1} for the fused next-layer transform (clamped at the
    # last layer, where the fetched block is unused).
    w_index = lambda l, i: (jnp.minimum(l + 1, num_layers - 1), 0, 0)

    return pl.pallas_call(
        kernel,
        out_shape=jax.ShapeDtypeStruct((n_pad, f_pad), jnp.float32),
        grid_spec=pltpu.PrefetchScalarGridSpec(
            num_scalar_prefetch=0,
            grid=(num_layers, num_row_blocks),
            in_specs=[
                a_spec,                                                # A_hat (bf16)
                pl.BlockSpec((n_pad, f_pad), lambda l, i: (0, 0)),     # XW_0 (bf16, once)
                pl.BlockSpec((1, f_pad, f_pad), w_index),              # W_{l+1} (bf16)
                pl.BlockSpec((1, 1, f_pad), lambda l, i: (l, 0, 0)),   # b_l (f32)
            ],
            # Resident output block, written only by the last layer.
            out_specs=pl.BlockSpec((n_pad, f_pad), lambda l, i: (0, 0)),
            scratch_shapes=[
                pltpu.VMEM((2 * n_pad, f_pad), jnp.bfloat16),          # XW ping-pong
            ],
        ),
        compiler_params=pltpu.CompilerParams(
            # Both axes carry dependencies through the XW ping-pong scratch.
            dimension_semantics=("arbitrary", "arbitrary"),
            vmem_limit_bytes=vmem_limit_bytes),
    )(a_pad_bf16, xw0_bf16, w_stack_bf16, b_stack)


# ------------------------------- glue (JAX) ----------------------------------
def gcn_normalized_adjacency(edge_index, num_nodes):
    """Dense D^-1/2 (A + I) D^-1/2, symmetrized, self-loop weight forced to 1
    (matches PyG GCNConv add_remaining_self_loops on an unweighted graph)."""
    src, dst = edge_index[0], edge_index[1]
    a = jnp.zeros((num_nodes, num_nodes), jnp.float32)
    a = a.at[src, dst].set(1.0)
    a = jnp.maximum(a, a.T)                                   # undirected
    idx = jnp.arange(num_nodes)
    a = a.at[idx, idx].set(1.0)                               # remaining self loops
    deg = a.sum(axis=1)
    d_inv_sqrt = jnp.where(deg > 0, 1.0 / jnp.sqrt(deg), 0.0)
    return d_inv_sqrt[:, None] * a * d_inv_sqrt[None, :]


def glorot(key, fan_in, fan_out):
    limit = jnp.sqrt(6.0 / (fan_in + fan_out))
    return jax.random.uniform(key, (fan_in, fan_out), jnp.float32, -limit, limit)


def init_params(key, in_channels, hidden_channels, out_channels, num_layers):
    """Parameter init mirroring the stack of OurModelLayer(GCN), unbias=False."""
    if num_layers == 1:
        dims = [(in_channels, out_channels)]
    else:
        dims = [(in_channels, hidden_channels)]
        dims += [(hidden_channels, hidden_channels)] * (num_layers - 2)
        dims += [(hidden_channels, out_channels)]
    params = []
    for i, (fi, fo) in enumerate(dims):
        k = jax.random.fold_in(key, i)
        w = glorot(k, fi, fo)
        b = jnp.zeros((fo,), jnp.float32)       # bias present, zero-init
        params.append((w, b))
    return params


def pack_params(params, f_pad):
    """Stack per-layer (W, b) into zero-padded [L, f_pad, f_pad] / [L, 1, f_pad]."""
    num_layers = len(params)
    w_stack = jnp.zeros((num_layers, f_pad, f_pad), jnp.float32)
    b_stack = jnp.zeros((num_layers, 1, f_pad), jnp.float32)
    for l, (w, b) in enumerate(params):
        fi, fo = w.shape
        w_stack = w_stack.at[l, :fi, :fo].set(w)
        b_stack = b_stack.at[l, 0, :fo].set(b)
    return w_stack, b_stack


def model_forward(x, edge_index, params, num_layers):
    """Reproduces Model.forward(x, edge_index, drop_rate=0)."""
    n, in_ch = x.shape
    out_ch = params[-1][0].shape[1]
    a_hat = gcn_normalized_adjacency(edge_index, n)

    # Lane-dense feature padding (all layers share one padded width).
    f_dims = [in_ch] + [p[0].shape[1] for p in params]
    f_pad = _round_up(max(f_dims), 128)

    vmem_budget = _vmem_budget_bytes()

    # Row tiling: one block for small graphs; bigger tiles amortize the per-step
    # grid overhead, v7x's 64 MiB VMEM prefers smaller tiles than v5e/v6e.
    if n <= 512:
        n_pad = _round_up(n, 8)
        tm = n_pad
    else:
        tm = 256 if vmem_budget < 96 * 2**20 else 512
        n_pad = _round_up(n, tm)

    # Resident-A decision (conservative: assume double-buffered blocks).
    common_bytes = (2 * n_pad * f_pad * 2      # XW ping-pong scratch (bf16)
                    + 2 * n_pad * f_pad * 2    # XW_0 input (bf16)
                    + 2 * n_pad * f_pad * 4    # resident f32 output
                    + 4 * f_pad * f_pad * 2    # W double buffer (bf16)
                    + 64 * 1024)
    a_resident = common_bytes + 2 * n_pad * n_pad * 2 <= int(0.85 * vmem_budget)
    # TODO(synk): block-sparse A_hat streaming (scalar-prefetched column-block
    # indices) for large sparse graphs where even row tiles of dense A are waste.

    a_pad = (jnp.zeros((n_pad, n_pad), jnp.float32)
             .at[:n, :n].set(a_hat).astype(jnp.bfloat16))
    x_pad = jnp.zeros((n_pad, f_pad), jnp.float32).at[:n, :in_ch].set(x)

    w_stack_f32, b_stack = pack_params(params, f_pad)
    # Layer-0 feature transform precomputed in XLA; X never enters the kernel.
    xw0 = jnp.dot(x_pad, w_stack_f32[0]).astype(jnp.bfloat16)

    out_pad = fused_gcn_stack(
        a_pad, xw0, w_stack_f32.astype(jnp.bfloat16), b_stack,
        num_layers=num_layers, tm=tm, n_pad=n_pad, f_pad=f_pad,
        a_resident=a_resident, vmem_limit_bytes=vmem_budget)
    return out_pad[:n, :out_ch]


def model_forward_ref(x, edge_index, params, num_layers):
    """Pure-JAX f32 reference of Model.forward (for a sanity check)."""
    a_hat = gcn_normalized_adjacency(edge_index, x.shape[0])
    h = x
    for l, (w, b) in enumerate(params):
        h = a_hat @ (h @ w) + b[None, :]
        if l < num_layers - 1:
            h = jnp.maximum(h, 0.0)
    return h


# --------------------------------- main ---------------------------------------
if __name__ == "__main__":
    key = jax.random.PRNGKey(0)

    num_nodes = 16
    in_channels = 32
    hidden_channels = 16
    out_channels = 7
    num_layers = 8

    k_x, k_e, k_p = jax.random.split(key, 3)
    x = jax.random.normal(k_x, (num_nodes, in_channels), jnp.float32)

    # small random graph (directed edge list; symmetrized inside the glue)
    num_edges = 40
    src = jax.random.randint(jax.random.fold_in(k_e, 0), (num_edges,), 0, num_nodes)
    dst = jax.random.randint(jax.random.fold_in(k_e, 1), (num_edges,), 0, num_nodes)
    edge_index = jnp.stack([src, dst], axis=0)

    params = init_params(k_p, in_channels, hidden_channels, out_channels, num_layers)

    out = model_forward(x, edge_index, params, num_layers)
    jax.block_until_ready(out)
    assert out.shape == (num_nodes, out_channels)

    # Loose sanity check vs. f32 reference (kernel uses bf16 MXU inputs).
    ref = model_forward_ref(x, edge_index, params, num_layers)
    err = jnp.max(jnp.abs(out - ref))
    tol = 0.1 + 0.1 * jnp.max(jnp.abs(ref))
    assert float(err) <= float(tol), f"mismatch vs reference: {float(err)}"

    print("KERNEL_OK")
</pallas_src>

<mosaic_0001>
module attributes {stable_mosaic.version = 11 : i64} {
  func.func @_fused_gcn_stack_kernel(%arg0: i32, %arg1: i32, %arg2: memref<16x16xbf16, #tpu.memory_space<vmem>>, %arg3: memref<16x128xbf16, #tpu.memory_space<vmem>>, %arg4: memref<1x128x128xbf16, #tpu.memory_space<vmem>>, %arg5: memref<1x1x128xf32, #tpu.memory_space<vmem>>, %arg6: memref<16x128xf32, #tpu.memory_space<vmem>>, %arg7: memref<32x128xbf16, #tpu.memory_space<vmem>>) attributes {dimension_semantics = [#tpu.dimension_semantics<arbitrary>, #tpu.dimension_semantics<arbitrary>], iteration_bounds = array<i64: 8, 1>, scalar_prefetch = 0 : i64, scratch_operands = 1 : i64, tpu.core_type = #tpu.core_type<tc>, window_params = [{pipeline_mode = #tpu.pipeline_mode<synchronous>, transform_indices = @transform_0, window_bounds = array<i64: 16, 16>}, {pipeline_mode = #tpu.pipeline_mode<synchronous>, transform_indices = @transform_1, window_bounds = array<i64: 16, 128>}, {transform_indices = @transform_2, window_bounds = array<i64: 1, 128, 128>}, {transform_indices = @transform_3, window_bounds = array<i64: 1, 1, 128>}, {pipeline_mode = #tpu.pipeline_mode<synchronous>, transform_indices = @transform_4, window_bounds = array<i64: 16, 128>}]} {
    %c16_i32 = arith.constant 16 : i32
    %0 = arith.muli %arg1, %c16_i32 : i32
    %1 = tpu.assume_multiple %0, 16 : i32
    %c2_i32 = arith.constant 2 : i32
    %c0_i32 = arith.constant 0 : i32
    %2 = arith.cmpi eq, %c2_i32, %c0_i32 : i32
    %c1_i32 = arith.constant 1 : i32
    %3 = arith.select %2, %c1_i32, %c2_i32 : i32
    %4 = arith.remsi %arg0, %3 : i32
    %c0_i32_0 = arith.constant 0 : i32
    %5 = arith.cmpi ne, %4, %c0_i32_0 : i32
    %c0_i32_1 = arith.constant 0 : i32
    %6 = arith.cmpi slt, %4, %c0_i32_1 : i32
    %c0_i32_2 = arith.constant 0 : i32
    %7 = arith.cmpi slt, %3, %c0_i32_2 : i32
    %8 = arith.xori %6, %7 : i1
    %9 = arith.andi %8, %5 : i1
    %10 = arith.addi %4, %3 : i32
    %11 = arith.select %9, %10, %4 : i32
    %c16_i32_3 = arith.constant 16 : i32
    %12 = arith.muli %11, %c16_i32_3 : i32
    %13 = tpu.assume_multiple %12, 16 : i32
    %c1_i32_4 = arith.constant 1 : i32
    %14 = arith.subi %c1_i32_4, %11 : i32
    %c16_i32_5 = arith.constant 16 : i32
    %15 = arith.muli %14, %c16_i32_5 : i32
    %c16_i32_6 = arith.constant 16 : i32
    %16 = arith.muli %arg1, %c16_i32_6 : i32
    %17 = arith.addi %15, %16 : i32
    %18 = tpu.assume_multiple %17, 16 : i32
    %c0_i32_7 = arith.constant 0 : i32
    %19 = arith.cmpi eq, %arg0, %c0_i32_7 : i32
    %c0_i32_8 = arith.constant 0 : i32
    %20 = arith.cmpi eq, %arg1, %c0_i32_8 : i32
    %21 = arith.andi %19, %20 : i1
    %22 = arith.extui %21 : i1 to i32
    %c0_i32_9 = arith.constant 0 : i32
    %23 = arith.cmpi ne, %22, %c0_i32_9 : i32
    scf.if %23 {
      %c0_17 = arith.constant 0 : index
      %c0_18 = arith.constant 0 : index
      %39 = vector.load %arg3[%c0_17, %c0_18] : memref<16x128xbf16, #tpu.memory_space<vmem>>, vector<16x128xbf16>
      %c0_19 = arith.constant 0 : index
      %c0_20 = arith.constant 0 : index
      %40 = vector.load %arg7[%c0_19, %c0_20] : memref<32x128xbf16, #tpu.memory_space<vmem>>, vector<16x128xbf16>
      tpu.vector_store %arg7[%c0_19, %c0_20], %39 {strides = array<i32>} : memref<32x128xbf16, #tpu.memory_space<vmem>>, vector<16x128xbf16>,
    } else {
    }
    %24 = arith.index_cast %1 : i32 to index
    %c0 = arith.constant 0 : index
    %25 = vector.load %arg2[%24, %c0] : memref<16x16xbf16, #tpu.memory_space<vmem>>, vector<16x16xbf16>
    %26 = arith.index_cast %13 : i32 to index
    %c0_10 = arith.constant 0 : index
    %27 = vector.load %arg7[%26, %c0_10] : memref<32x128xbf16, #tpu.memory_space<vmem>>, vector<16x128xbf16>
    %cst = arith.constant dense<0.000000e+00> : vector<16x128xf32>
    %28 = tpu.matmul %25, %27, %cst {dimension_numbers = #tpu.dot_dimension_numbers<[1], [0], [0], [1], [0, 0, 1, 1], [], []>} : vector<16x16xbf16>, vector<16x128xbf16>, vector<16x128xf32> -> vector<16x128xf32>
    %c0_11 = arith.constant 0 : index
    %c0_12 = arith.constant 0 : index
    %c0_13 = arith.constant 0 : index
    %29 = vector.load %arg5[%c0_11, %c0_12, %c0_13] : memref<1x1x128xf32, #tpu.memory_space<vmem>>, vector<1x1x128xf32>
    %30 = vector.shape_cast %29 : vector<1x1x128xf32> to vector<1x128xf32>
    %31 = vector.broadcast %30 : vector<1x128xf32> to vector<16x128xf32>
    %32 = arith.addf %28, %31 : vector<16x128xf32>
    %c7_i32 = arith.constant 7 : i32
    %33 = arith.cmpi slt, %arg0, %c7_i32 : i32
    %34 = arith.extui %33 : i1 to i32
    %c0_i32_14 = arith.constant 0 : i32
    %35 = arith.cmpi ne, %34, %c0_i32_14 : i32
    scf.if %35 {
      %cst_17 = arith.constant 0.000000e+00 : f32
      %39 = vector.broadcast %cst_17 : f32 to vector<16x128xf32>
      %40 = arith.maximumf %32, %39 : vector<16x128xf32>
      %41 = arith.truncf %40 : vector<16x128xf32> to vector<16x128xbf16>
      %c0_18 = arith.constant 0 : index
      %c0_19 = arith.constant 0 : index
      %c0_20 = arith.constant 0 : index
      %42 = vector.load %arg4[%c0_18, %c0_19, %c0_20] : memref<1x128x128xbf16, #tpu.memory_space<vmem>>, vector<1x128x128xbf16>
      %43 = vector.shape_cast %42 : vector<1x128x128xbf16> to vector<128x128xbf16>
      %cst_21 = arith.constant dense<0.000000e+00> : vector<16x128xf32>
      %44 = tpu.matmul %41, %43, %cst_21 {dimension_numbers = #tpu.dot_dimension_numbers<[1], [0], [0], [1], [0, 0, 1, 1], [], []>} : vector<16x128xbf16>, vector<128x128xbf16>, vector<16x128xf32> -> vector<16x128xf32>
      %45 = arith.truncf %44 : vector<16x128xf32> to vector<16x128xbf16>
      %46 = arith.index_cast %18 : i32 to index
      %c0_22 = arith.constant 0 : index
      %47 = vector.load %arg7[%46, %c0_22] : memref<32x128xbf16, #tpu.memory_space<vmem>>, vector<16x128xbf16>
      tpu.vector_store %arg7[%46, %c0_22], %45 {strides = array<i32>} : memref<32x128xbf16, #tpu.memory_space<vmem>>, vector<16x128xbf16>,
    } else {
    }
    %c7_i32_15 = arith.constant 7 : i32
    %36 = arith.cmpi eq, %arg0, %c7_i32_15 : i32
    %37 = arith.extui %36 : i1 to i32
    %c0_i32_16 = arith.constant 0 : i32
    %38 = arith.cmpi ne, %37, %c0_i32_16 : i32
    scf.if %38 {
      %39 = arith.index_cast %1 : i32 to index
      %c0_17 = arith.constant 0 : index
      %40 = vector.load %arg6[%39, %c0_17] : memref<16x128xf32, #tpu.memory_space<vmem>>, vector<16x128xf32>
      tpu.vector_store %arg6[%39, %c0_17], %32 {strides = array<i32>} : memref<16x128xf32, #tpu.memory_space<vmem>>, vector<16x128xf32>,
    } else {
    }
    return
  }
  func.func @transform_0(%arg0: i32, %arg1: i32) -> (i32, i32) {
    %c0_i32 = arith.constant 0 : i32
    %c0_i32_0 = arith.constant 0 : i32
    %c0_i32_1 = arith.constant 0 : i32
    return %c0_i32, %c0_i32_0 : i32, i32
  }
  func.func @transform_1(%arg0: i32, %arg1: i32) -> (i32, i32) {
    %c0_i32 = arith.constant 0 : i32
    %c0_i32_0 = arith.constant 0 : i32
    %c0_i32_1 = arith.constant 0 : i32
    return %c0_i32, %c0_i32_0 : i32, i32
  }
  func.func @transform_2(%arg0: i32, %arg1: i32) -> (i32, i32, i32) {
    %c1_i32 = arith.constant 1 : i32
    %0 = arith.addi %arg0, %c1_i32 : i32
    %c7_i32 = arith.constant 7 : i32
    %1 = arith.minsi %0, %c7_i32 : i32
    %c0_i32 = arith.constant 0 : i32
    %c0_i32_0 = arith.constant 0 : i32
    %c0_i32_1 = arith.constant 0 : i32
    return %1, %c0_i32, %c0_i32_0 : i32, i32, i32
  }
  func.func @transform_3(%arg0: i32, %arg1: i32) -> (i32, i32, i32) {
    %c0_i32 = arith.constant 0 : i32
    %c0_i32_0 = arith.constant 0 : i32
    %c0_i32_1 = arith.constant 0 : i32
    return %arg0, %c0_i32, %c0_i32_0 : i32, i32, i32
  }
  func.func @transform_4(%arg0: i32, %arg1: i32) -> (i32, i32) {
    %c0_i32 = arith.constant 0 : i32
    %c0_i32_0 = arith.constant 0 : i32
    %c0_i32_1 = arith.constant 0 : i32
    return %c0_i32, %c0_i32_0 : i32, i32
  }
}

</mosaic_0001>

<bundles_post_ra>
// kernel: tpu_custom_call.1
= control target key start
LH: loop header
LB: loop body
LE: loop exit
PB: predicated region body
PF: predicated region fallthrough
CT: control target
= control target key end

     0   :  { %9 = vsyncpa [#allocation4], 0  ;;  %s1236_s0 = inlined_call_operand.hbm [shape: bf16[16,16], index: 0, kind: input, shape index: {}]   ;;  %s1237_s1 = inlined_call_operand.hbm [shape: bf16[16,128], index: 1, kind: input, shape index: {}]   ;;  %s1238_s2 = inlined_call_operand.hbm [shape: bf16[8,128,128], index: 2, kind: input, shape index: {}]   ;;  %s1239_s3 = inlined_call_operand.vmem [shape: f32[8,1,128], index: 3, kind: input, shape index: {}]   ;;  %s1240_s4 = inlined_call_operand.hbm [shape: f32[16,128], index: 4, kind: output, shape index: {}]  }
   0x1   :  { %10 = vsyncpa [#allocation7], 0 }
   0x2   :  { %11 = vsyncpa [#allocation5], 0  ;;  %s990_s15 = smov 0   ;;  %s992_s16 = smov 0  }
   0x3   :  { %s994_s17 = smov 0   ;;  %s996_s18 = smov 0  }
   0x4   :  { %s998_s19 = smov 0   ;;  %s1000_s20 = smov 0  }
   0x5 LB: > { %s1019_s21 = sadd.s32 4294967295, %s951_s20   ;;  %p91_p0 = scmp.ne.s32.totalorder %s939_s17, %s935_s16  ;;  %s951_s20 = sphi %s1000_s20, %s17_s20   ;;  %s947_s19 = sphi %s998_s19, %s1262_s19   ;;  %s943_s18 = sphi %s996_s18, %s1261_s18   ;;  %s939_s17 = sphi %s994_s17, %s1260_s17   ;;  %s935_s16 = sphi %s992_s16, %s1259_s16   ;;  %s931_s15 = sphi %s990_s15, %s1258_s15  }
   0x6   : > { %p92_p1 = scmp.eq.s32.totalorder %s951_s20, 0  ;;  %p97_p2 = scmp.ne.s32.totalorder %s935_s16, %s931_s15 }
   0x7   : > { %p1241_p3 = scmp.eq.s32.totalorder %s1019_s21, 0  ;;  %p600_p4 = scmp.ge.s32.totalorder %s951_s20, 1 }
   0x8   : > { %p93_p5 = por %p92_p1, %p91_p0  ;;  %p155_p6 = scmp.lt.s32.totalorder %s951_s20, 9 }
   0x9   : > { %p1030_p7 = por %p1241_p3, %p97_p2  ;;  %s953_s24 = smov [#allocation3]  }
   0xa   : > { %p1034_p8 = pnand %p600_p4, %p155_p6  ;;  %s167_s25 = sshll.u32 %s953_s24, 4  ;;  %s168_s25 = int_to_ptr.vmem [resolvable:$true] %s167_s25 }
   0xb   : > { %s1245_s22 = scalar_select %p1030_p7, 1, 0 }
   0xc   : > { %s1246_s23 = scalar_select %p1034_p8, 1, 0 }
   0xd   : > { %p690_p9 = pneg %p1034_p8  ;;  %p703_p11 = scmp.lt.s32.totalorder %s951_s20, 8 }
   0xe   : > { %s777_s30 = scalar_lea.hbm %s1236_s0, 128 }
   0xf   : > { %p1042_p10 = pnand %p690_p9, %p1241_p3  ;;  %p1047_p12 = pnand %p703_p11, %p93_p5 }
  0x10   : > { %p778_p13 = scmp.ne.s32.totalorder %s1236_s0, %s777_s30  ;;  %p784_p4 = scmp.lt.u32.totalorder %s777_s30, %s1236_s0 }
  0x11   : > { %s1248_s27 = scalar_select %p1047_p12, 1, 0 }
  0x12   : > { %p779_p0 = pneg %p1042_p10 }
  0x14   : > { %p780_p1 = pnand %p779_p0, %p778_p13 }
  0x16   : > { %p781_p2 = pneg %p780_p1 }
  0x18   : > { %p786_p5 = pnand %p784_p4, %p781_p2 }
  0x1a   : > { %789 = shalt.err (!%p786_p5)
}
  0x1b   : > { %s790_s9 = scalar_lea.vmem %s168_s25, 128  ;;  %p798_p3 = scmp.lt.s32.totalorder %s168_s25, %s168_s25 }
  0x1c   : > { %p791_p6 = scmp.ne.s32.totalorder %s168_s25, %s790_s9  ;;  %p799_p7 = scmp.lt.s32.totalorder %s790_s9, %s790_s9 }
  0x1e   : > { %p793_p9 = pnand %p791_p6, %p779_p0  ;;  %p800_p8 = por %p799_p7, %p798_p3 }
  0x20   : > { %p794_p11 = pneg %p793_p9 }
  0x22   : > { %p801_p12 = pnand %p800_p8, %p794_p11 }
  0x24   : > { %804 = shalt.err (!%p801_p12)
}
  0x25   : > { %s954_s10 = smov 64   ;;  %s955_s11 = smov 4  }
  0x26   : > { %693 = dma.hbm_to_vmem [thread:$0]  (!%p1042_p10), %s1236_s0, 128, %s168_s25, [#allocation4], %s954_s10, %s954_s10, %s955_s11  }
  0x27   : > { %s956_s14 = smov [#allocation6]   ;;  %s805_s29 = scalar_lea.hbm %s1237_s1, 128 }
  0x28   : > { %s180_s15 = sshll.u32 %s956_s14, 4  ;;  %p806_p3 = scmp.ne.s32.totalorder %s1237_s1, %s805_s29  ;;  %s181_s15 = int_to_ptr.vmem [resolvable:$true] %s180_s15 }
  0x29   : > { %p812_p12 = scmp.lt.u32.totalorder %s805_s29, %s1237_s1 }
  0x2a   : > { %p808_p7 = pnand %p806_p3, %p779_p0 }
  0x2c   : > { %p809_p8 = pneg %p808_p7 }
  0x2e   : > { %p814_p13 = pnand %p812_p12, %p809_p8 }
  0x30   : > { %817 = shalt.err (!%p814_p13)
}
  0x31   : > { %s818_s25 = scalar_lea.vmem %s181_s15, 128  ;;  %p826_p5 = scmp.lt.s32.totalorder %s181_s15, %s181_s15 }
  0x32   : > { %p819_p1 = scmp.ne.s32.totalorder %s181_s15, %s818_s25  ;;  %p827_p6 = scmp.lt.s32.totalorder %s818_s25, %s818_s25 }
  0x34   : > { %p821_p2 = pnand %p819_p1, %p779_p0  ;;  %p828_p9 = por %p827_p6, %p826_p5 }
  0x36   : > { %p822_p4 = pneg %p821_p2 }
  0x38   : > { %p829_p11 = pnand %p828_p9, %p822_p4 }
  0x3a   : > { %832 = shalt.err (!%p829_p11)
}
  0x3b   : > { %696 = dma.hbm_to_vmem [thread:$0]  (!%p1042_p10), %s1237_s1, 128, %s181_s15, [#allocation7], %s954_s10, %s954_s10, %s955_s11  }
  0x3c   : > { %s29_s12 = sadd.s32 1, %s947_s19  ;;  %s194_s14 = sand.u32 1, %s951_s20  }
  0x3d   : > { %p31_p0 = scmp.ge.s32.totalorder %s29_s12, 8  ;;  %p76_p3 = scmp.lt.s32.totalorder %s29_s12, 7 }
  0x3e   : > { %s196_s24 = sand.u32 1, %s939_s17   ;;  %p1250_p12 = scmp.ne.s32.totalorder %s1248_s27, 0 }
  0x3f   : > { %s1103_s28 = scalar_select %p31_p0, 0, %s29_s12  }
  0x40   : > { %s1264_s12 = smov (!%p76_p3, %s29_s12), 7  ;;  %s604_s29 = sshll.u32 %s196_s24, 6 }
  0x41   : > { %s78_s26 = sadd.s32 1, %s1103_s28  ;;  %s637_s30 = sshll.u32 %s1264_s12, 10 }
  0x42   : > { %p79_p7 = scmp.lt.s32.totalorder %s78_s26, 7  ;;  %s1109_s15 = scalar_lea.hbm %s1238_s2, %s637_s30 }
  0x43   : > { %s198_s7 = scalar_lea.vmem [#allocation8], %s604_s29  ;;  %s1117_s24 = scalar_lea.sflag [#allocation4], %s194_s14 }
  0x44   : > { %s1266_s26 = smov (!%p79_p7, %s78_s26), 7  ;;  %s208_s25 = sshll.u32 %s198_s7, 4  ;;  %s1111_s25 = int_to_ptr.vmem [resolvable:$true] %s208_s25 }
  0x45   : > { %s81_s8 = ssub.s32 %s1264_s12, %s1266_s26  ;;  %s833_s13 = scalar_lea.hbm %s1109_s15, 1024 }
  0x46   : > { %p1113_p10 = scmp.eq.s32.totalorder %s81_s8, 0  ;;  %p834_p8 = scmp.ne.s32.totalorder %s1109_s15, %s833_s13 }
  0x47   : > { %p835_p13 = pneg %p1250_p12  ;;  %s838_s12 = scalar_lea.hbm %s1238_s2, 8192 }
  0x48   : > { %p839_p4 = scmp.lt.u32.totalorder %s1109_s15, %s1238_s2  ;;  %p840_p5 = scmp.lt.u32.totalorder %s838_s12, %s833_s13 }
  0x49   : > { %p836_p1 = pnand %p835_p13, %p834_p8  ;;  %p842_p9 = scmp.lt.u32.totalorder %s833_s13, %s1109_s15 }
  0x4a   : > { %p841_p6 = por %p840_p5, %p839_p4 }
  0x4b   : > { %p837_p2 = pneg %p836_p1 }
  0x4c   : > { %p843_p11 = por %p842_p9, %p841_p6 }
  0x4e   : > { %p844_p0 = pnand %p843_p11, %p837_p2 }
  0x50   : > { %847 = shalt.err (!%p844_p0)
}
  0x51   : > { %s848_s14 = scalar_lea.vmem %s1111_s25, 1024  ;;  %s957_s6 = smov [#allocation8]  }
  0x52   : > { %p849_p3 = scmp.ne.s32.totalorder %s1111_s25, %s848_s14  ;;  %s853_s7 = sshll.u32 %s957_s6, 4  ;;  %s854_s7 = int_to_ptr.vmem [resolvable:$false] %s853_s7 }
  0x53   : > { %s855_s8 = scalar_lea.vmem %s854_s7, 2048  ;;  %p856_p1 = scmp.lt.s32.totalorder %s1111_s25, %s854_s7 }
  0x54   : > { %p851_p7 = pnand %p849_p3, %p835_p13  ;;  %p857_p4 = scmp.lt.s32.totalorder %s855_s8, %s848_s14 }
  0x56   : > { %p852_p8 = pneg %p851_p7  ;;  %p858_p5 = por %p857_p4, %p856_p1 }
  0x58   : > { %p859_p6 = pnand %p858_p5, %p852_p8 }
  0x5a   : > { %862 = shalt.err (!%p859_p6)
}
  0x5b   : > { %700 = dma.hbm_to_vmem [thread:$0]  (!%p1250_p12), %s1109_s15, 1024, %s1111_s25, %s1117_s24, %s954_s10, %s954_s10, %s955_s11  }
  0x5c   : > { %s1251_s13 = sadd.s32 1, %s939_s17  ;;  %p1252_p13 = scmp.ne.s32.totalorder %s1246_s23, 0 }
  0x5d   : > { %s1153_s30 = scalar_select %p1113_p10, %s939_s17, %s1251_s13  }
  0x5e   : > { %226 = sbr.rel (%p1252_p13) target bundleno = 601 (0x259), region = 36  ;;  %p1253_p2 = scmp.eq.s32.totalorder (!%p1252_p13), %s1019_s21, 0 }
  0x65   : > { %914 = dma.done.wait (%p1253_p2), [#allocation4], 128   ;;  %p1254_p9 = pmov %p1253_p2 }
  0x66   : > { %p1255_p11 = pmov %p1253_p2 }
  0x67   : > { %916 = vsyncadd (%p1254_p9), [#allocation4], 4294967168 }
  0x68   : > { %918 = dma.done.wait (%p1255_p11), [#allocation7], 128   ;;  %p1256_p0 = pmov %p1253_p2 }
  0x69   : > { %s236_s27 = sand.u32 1, %s1019_s21   ;;  %s238_s10 = sand.u32 1, %s935_s16  }
  0x6a   : > { %920 = vsyncadd (%p1256_p0), [#allocation7], 4294967168  ;;  %s610_s11 = sshll.u32 %s238_s10, 6  ;;  %s237_s23 = scalar_lea.sflag [#allocation4], %s236_s27 }
  0x6b   : > { %s1167_s15 = scalar_lea.vmem [#allocation8], %s610_s11  ;;  %p1257_p10 = scmp.ne.s32.totalorder %s1245_s22, 0 }
  0x6d   : > { %922 = dma.done.wait (%p1257_p10), %s237_s23, 1024  }
  0x6e   : > { %924 = vsyncadd (%p1257_p10), %s237_s23, 4294966272  ;;  %p266_p12 = scmp.lt.s32.totalorder %s943_s18, 7  ;;  %p271_p3 = scmp.lt.s32.totalorder %s943_s18, 0 }
  0x6f   : > { %s272_s25 = ssub.s32 0, %s943_s18  ;;  %p287_p7 = scmp.eq.s32.totalorder %s943_s18, 0 }
  0x70   : > { %s267_s9 = scalar_select %p266_p12, %s943_s18, 7 }
  0x71   : > { %s611_s24 = smin.u32 %s943_s18, %s272_s25  ;;  %v767_v0 = vld [vmem:[#allocation6] sm:$0xff] (%p287_p7)  }
  0x72   : > { %s268_s26 = scalar_lea.vmem %s1239_s3, %s267_s9  ;;  %s274_s5 = sand.u32 1, %s611_s24   ;;  %301 = vst [vmem:[#allocation2] sm:$0xff] (%p287_p7), %v767_v0 }
  0x73   : > { %s275_s14 = ssub.s32 0, %s274_s5  ;;  %292 = sbr.rel (!%p287_p7) target bundleno = 122 (0x7a), region = 52 }
  0x74   : > { %s1268_s14 = smov (!%p271_p3, %s275_s14), %s274_s5 }
  0x75   : > { %p613_p8 = scmp.lt.s32.totalorder %s1268_s14, 0  ;;  %s281_s22 = sadd.s32 2, %s1268_s14 }
  0x77   : > { %s1270_s22 = smov (!%p613_p8, %s281_s22), %s1268_s14 }
  0x78   : > { %s614_s6 = sshll.u32 %s1270_s22, 4  ;;  %s284_s7 = ssub.s32 1, %s1270_s22 }
  0x79   : > { %s1182_s8 = sshll.u32 %s284_s7, 4 }
  0x7a PF: > { %s308_s13 = sshra.s32 %s614_s6, 4  ;;  %v958_v1 = vmov 0.0   ;;  %vm959_vm0 = vmmov 0   ;;  %v768_v3 = vld [vmem:[#allocation3] sm:$0xff]   ;;  %vm325_vm1 = vcmask 130048   ;;  %p622_p1 = scmp.ge.s32.totalorder %s943_s18, 7 }
  0x7b   : > { %650 = vmatprep.subr.bf16.mxu0 %v958_v1  ;;  %s618_s27 = sshll.u32 %s308_s13, 3  ;;  %652 = vmatprep.mubr.msk.bf16.mxu0 %vm959_vm0, %v958_v1  ;;  %v619_v4 = vld [vmem:[%s268_s26] ss:$0 sm:$0xff]  ;;  %v960_v12 = vmov (!%p622_p1), 0.0   ;;  %v770_v13 = vld [vmem:[%s1167_s15 + $0x8] sm:$0xff] (!%p622_p1)   ;;  %vm961_vm2 = vmmov (!%p622_p1), 0  }
  0x7c   : > { %s311_s10 = scalar_lea.vmem [#allocation2], %s618_s27  ;;  %v769_v11 = vld [vmem:[%s1167_s15] sm:$0xff] (!%p622_p1)   ;;  %v771_v14 = vld [vmem:[%s1167_s15 + $0x10] sm:$0xff] (!%p622_p1)   ;;  %v772_v15 = vld [vmem:[%s1167_s15 + $0x18] sm:$0xff] (!%p622_p1)   ;;  %s483_s11 = sshra.s32 (!%p622_p1), %s1182_s8, 4 }
  0x7d   : > { %v312_v2 = vld [vmem:[%s311_s10] sm:$0xff]  ;;  %v774_v17 = vld [vmem:[%s1167_s15 + $0x28] sm:$0xff] (!%p622_p1)   ;;  %v775_v18 = vld [vmem:[%s1167_s15 + $0x30] sm:$0xff] (!%p622_p1)   ;;  %s631_s23 = sshll.u32 (!%p622_p1), %s483_s11, 3 }
  0x7e   : > { %651 = vmatpush3.bf16.msra.mxu0 %v312_v2  ;;  %v773_v16 = vld [vmem:[%s1167_s15 + $0x20] sm:$0xff] (!%p622_p1)   ;;  %v776_v21 = vld [vmem:[%s1167_s15 + $0x38] sm:$0xff] (!%p622_p1)   ;;  %s486_s25 = scalar_lea.vmem (!%p622_p1), [#allocation2], %s631_s23 }
  0x7f   : > { %656 = vmatprep.subr.bf16.mxu0 (!%p622_p1), %v960_v12 }
  0x81   : > { %653 = vmatmul.mubr.msk.bf16.vlgmr.msra.gmra.mrb[0].mxu0 %vm325_vm1, %v768_v3 }
  0x82   : > { %657 = vmatpush3.bf16.msra.mxu0 (!%p622_p1), %v769_v11  ;;  %672 = vmatprep.mubr.msk.bf16.mxu0 (!%p622_p1), %vm961_vm2, %v960_v12 }
  0x83   : > { %658 = vmatprep.subr.bf16.mxu0 (!%p622_p1), %v960_v12 }
  0x86   : > { %659 = vmatpush3.bf16.msra.mxu0 (!%p622_p1), %v770_v13 }
  0x87   : > { %660 = vmatprep.subr.bf16.mxu0 (!%p622_p1), %v960_v12 }
  0x8a   : > { %661 = vmatpush3.bf16.msra.mxu0 (!%p622_p1), %v771_v14 }
  0x8b   : > { %662 = vmatprep.subr.bf16.mxu0 (!%p622_p1), %v960_v12 }
  0x8e   : > { %663 = vmatpush3.bf16.msra.mxu0 (!%p622_p1), %v772_v15 }
  0x8f   : > { %664 = vmatprep.subr.bf16.mxu0 (!%p622_p1), %v960_v12 }
  0x92   : > { %665 = vmatpush3.bf16.msra.mxu0 (!%p622_p1), %v773_v16 }
  0x93   : > { %666 = vmatprep.subr.bf16.mxu0 (!%p622_p1), %v960_v12 }
  0x96   : > { %667 = vmatpush3.bf16.msra.mxu0 (!%p622_p1), %v774_v17 }
  0x97   : > { %668 = vmatprep.subr.bf16.mxu0 (!%p622_p1), %v960_v12 }
  0x9a   : > { %669 = vmatpush3.bf16.msra.mxu0 (!%p622_p1), %v775_v18 }
  0x9b   : > { %670 = vmatprep.subr.bf16.mxu0 (!%p622_p1), %v960_v12 }
  0x9e   : > { %671 = vmatpush3.bf16.msra.mxu0 (!%p622_p1), %v776_v21 }
 0x151   : > { %373 = sbr.rel (%p622_p1) target bundleno = 566 (0x236), region = 56 }
 0x154   : > { %v363_v5 = vpop.f32.mrb[0].mxu0 }
 0x155   : > { %v364_v6 = vadd.f32 %v619_v4, %v363_v5  ;;  %v654_v7 = vpop.f32.mrb[1].mxu0 }
 0x156   : > { %v366_v8 = vpop.f32.mrb[2].mxu0 }
 0x157   : > { %v367_v9 = vadd.f32 %v619_v4, %v366_v8  ;;  %v655_v10 = vpop.f32.mrb[3].mxu0  ;;  %v374_v19 = vmax.f32 (!%p622_p1), %v364_v6, 0.0 }
 0x159   : > { %v375_v20 = vmax.f32 %v367_v9, 0.0 }
 0x15b   : > { %v376_v22 = vpack.c.bf16 %v375_v20, %v374_v19 }
 0x15d   : > { %673 = vmatmul.mubr.bf16.vlgmr.msra.gmra.mrb[0].mxu0 %v376_v22 }
 0x230   : > { %v475_v23 = vpop.f32.mrb[0].mxu0 }
 0x231   : > { %v674_v24 = vpop.f32.mrb[1].mxu0 }
 0x232   : > { %v478_v25 = vpop.f32.mrb[2].mxu0 }
 0x233   : > { %v482_v26 = vpack.c.bf16 %v478_v25, %v475_v23  ;;  %v675_v27 = vpop.f32.mrb[3].mxu0 }
 0x235   : > { %487 = vst [vmem:[%s486_s25] sm:$0xff] %v482_v26 }
 0x236 PF: > { %p632_p4 = scmp.ne.s32.totalorder %s943_s18, 7 }
 0x237   : > { %493 = vst [vmem:[#allocation9] sm:$0xff] (!%p632_p4), %v364_v6  ;;  %494 = vst [vmem:[#allocation9 + $0x8] sm:$0xff] (!%p632_p4), %v367_v9 }
 0x238   : > { %491 = sbr.rel (%p632_p4) target bundleno = 575 (0x23f), region = 60 }
 0x23f PF: > { %p706_p5 = scmp.eq.s32.totalorder %s1019_s21, 7  ;;  %s962_s15 = smov [#allocation9]  }
 0x240   : > { %s501_s9 = sshll.u32 %s962_s15, 4  ;;  %s502_s9 = int_to_ptr.vmem [resolvable:$true] %s501_s9 }
 0x241   : > { %s863_s24 = scalar_lea.vmem %s502_s9, 256  ;;  %p870_p9 = scmp.lt.s32.totalorder %s502_s9, %s502_s9 }
 0x242   : > { %p864_p6 = scmp.ne.s32.totalorder %s502_s9, %s863_s24  ;;  %p871_p11 = scmp.lt.s32.totalorder %s863_s24, %s863_s24 }
 0x244   : > { %p865_p13 = pnand %p864_p6, %p706_p5  ;;  %p872_p0 = por %p871_p11, %p870_p9 }
 0x246   : > { %p866_p2 = pneg %p865_p13 }
 0x248   : > { %p873_p10 = pnand %p872_p0, %p866_p2 }
 0x24a   : > { %876 = shalt.err (!%p873_p10)
}
 0x24b   : > { %s877_s12 = scalar_lea.hbm %s1240_s4, 256 }
 0x24c   : > { %p878_p12 = scmp.ne.s32.totalorder %s1240_s4, %s877_s12  ;;  %p883_p8 = scmp.lt.u32.totalorder %s877_s12, %s1240_s4 }
 0x24e   : > { %p879_p3 = pnand %p878_p12, %p706_p5 }
 0x250   : > { %p880_p7 = pneg %p879_p3 }
 0x252   : > { %p885_p1 = pnand %p883_p8, %p880_p7 }
 0x254   : > { %888 = shalt.err (!%p885_p1)
}
 0x255   : > { %s963_s6 = smov 128   ;;  %s964_s7 = smov 8  }
 0x256   : > { %687 = dma.vmem_to_hbm [thread:$0]  (%p706_p5), %s502_s9, 256, %s1240_s4, [#allocation5], %s963_s6, %s963_s6, %s964_s7  }
 0x257   : > { %926 = dma.done.wait (%p706_p5), [#allocation5], 256  }
 0x258   : > { %928 = vsyncadd (%p706_p5), [#allocation5], 4294967040 }
 0x259 PF: > { %s17_s20 = sadd.s32 1, %s951_s20   ;;  %s1258_s15 = smov %s935_s16 }
 0x25a   : > { %p14_p4 = scmp.ge.s32.totalorder %s17_s20, 10   ;;  %s1259_s16 = smov %s939_s17 }
 0x25b   : > { %s1260_s17 = smov %s1153_s30  ;;  %s1261_s18 = smov %s947_s19 }
 0x25c   : > { %s1262_s19 = smov %s1103_s28  ;;  %16 = sbr.rel (!%p14_p4) target bundleno = 5 (0x5), region = 99 }
 0x263   :  { %517 = vsyncpa [#allocation4], 1 }
 0x264   :  { %519 = vsyncpa [#allocation4 + $0x1], 1 }
 0x265   :  { %520 = vsyncpa [#allocation7], 1 }
 0x266   :  { %521 = vsyncpa [#allocation5], 1 }
 0x267   :  { %523 = vsyncpa [#allocation5 + $0x1], 1 }

</bundles_post_ra>
